<compile_context>
chip_gen: v5e
topology: v5e:2x2
jax: 0.10.0
libtpu: 0.0.40
codegen_flags: <defaults>
</compile_context>

<pallas_src>
import functools

import jax
import jax.numpy as jnp
import numpy as np
from jax import lax
from jax.experimental import pallas as pl
from jax.experimental.pallas import tpu as pltpu


def _texture_gram_kernel(x_ref, y_ref, ut_ref, ub_ref, vt_ref, vb_ref, acc_ref,
                         *, w, th, n_slabs, n_k, gram_dtype, needs_guard):
    """One grid step: one slab of TH image rows for every (b, c) channel map.

    x_ref, y_ref : (BC, TH*W)  flattened slab of x / y            (VMEM)
    ut/ub/vt/vb  : (BC, W)     wrapper-precomputed 3-tap horizontal sums of the
                               image row just above / below the slab, for
                               u = x - y and v = x + y (zeros at image border)
    acc_ref      : (BC, BC)    resident accumulator of D @ S^T    (VMEM output)
    """
    bc = x_ref.shape[0]
    L = th * w
    k = pl.program_id(1)

    @pl.when(k == 0)
    def _init():
        acc_ref[...] = jnp.zeros_like(acc_ref)

    def step():
        # Pooling math in f32 on every chip (v5e has no bf16 vector ALU); the
        # bf16 saving (input_dtype) is on the HBM DMA / pipeline buffers only.
        x = x_ref[...].astype(jnp.float32)
        y = y_ref[...].astype(jnp.float32)

        # Pooling is linear:  D = x_var - y_var = (x - y) - pool(x - y)
        #                     S = x_var + y_var = (x + y) - pool(x + y)
        u = x - y
        v = x + y

        # Edge masks hoisted out of hsum(): built once per grid step, reused by
        # both residuals.
        lane = lax.broadcasted_iota(jnp.int32, (bc, L), 1)
        col = lane % w                  # column inside an image row
        left_ok = col > 0               # has a left neighbour inside the image
        right_ok = col < w - 1          # has a right neighbour
        first_row = lane < w            # local row 0 of the slab
        last_row = lane >= L - w        # local row TH-1 of the slab

        def hsum(a):
            # 3-tap horizontal sum, zero-padded at the image's left/right edge.
            left = jnp.where(left_ok, pltpu.roll(a, shift=1, axis=1), 0.0)
            right = jnp.where(right_ok, pltpu.roll(a, shift=L - 1, axis=1), 0.0)
            return a + left + right

        def residual(a, top_hs, bot_hs):
            # top_hs / bot_hs arrive already horizontally summed, so only a
            # broadcast + select touches slab-sized data for the halos here.
            hs = hsum(a)
            up = jnp.where(first_row, jnp.tile(top_hs, (1, th)),
                           pltpu.roll(hs, shift=w, axis=1))
            down = jnp.where(last_row, jnp.tile(bot_hs, (1, th)),
                             pltpu.roll(hs, shift=L - w, axis=1))
            pooled = (hs + up + down) * (1.0 / 9.0)   # count_include_pad=True
            return a - pooled

        d = residual(u, ut_ref[...], ub_ref[...]).astype(gram_dtype)
        s = residual(v, vt_ref[...], vb_ref[...]).astype(gram_dtype)

        # Fused Gram-difference partial: acc += D @ S^T.  Contracting the lane
        # (pixel) axis of BOTH operands is the same dimension-numbers pattern
        # as flash attention's q @ k^T -> MXU transposed-RHS path, so no
        # explicit XLU transpose of S is materialised; f32 accumulation.
        dn = (((1,), (1,)), ((), ()))
        acc_ref[...] += lax.dot_general(d, s, dn,
                                        preferred_element_type=jnp.float32)

    if needs_guard:
        # Odd slab count split 2-way across v7x's TensorCores: the clamped
        # tail step on the second core is skipped.
        slab = pl.program_id(0) * n_k + k
        pl.when(slab < n_slabs)(step)
    else:
        step()


@functools.lru_cache(maxsize=None)
def _tpu_generation():
    """Best-effort TPU generation from device_kind; 0 if unknown."""
    try:
        kind = jax.devices()[0].device_kind.lower()
    except Exception:
        return 0
    for g in (7, 6, 5, 4):
        if f"v{g}" in kind or f"tpu{g}" in kind:
            return g
    return 0


def _chip_config():
    gen = _tpu_generation()
    if gen >= 7:
        # 2 TensorCores/chip, only 64 MiB VMEM per core: small slabs, 48 MiB cap,
        # unconditional 2-way megacore split.
        return dict(n_tc=2, slab_budget=2 << 20, vmem_limit=48 << 20)
    if gen in (5, 6):
        # Single TensorCore, 128 MiB VMEM: bigger slabs (fewer grid steps), no
        # parallel-axis overhead.
        return dict(n_tc=1, slab_budget=4 << 20, vmem_limit=100 << 20)
    # Unknown chip / emulator: conservative.
    return dict(n_tc=1, slab_budget=2 << 20, vmem_limit=48 << 20)


def _pick_tile_rows(h, w, bc, max_bytes, n_tc):
    """Largest TH dividing H whose (BC, TH*W) f32 slab respects the 128-lane
    block rule and the VMEM budget; on 2-TensorCore chips prefer slab counts
    divisible by the core count so the megacore split has no tail step."""
    aligned = [t for t in range(1, h + 1)
               if h % t == 0 and ((t * w) % 128 == 0 or t == h)]
    fitting = [t for t in aligned if bc * t * w * 4 <= max_bytes]
    if not fitting:
        # Graceful degradation: smallest lane-aligned slab (may exceed budget).
        # TODO(synk): tile the BC axis too for very large B*C*W inputs.
        return min(aligned)
    if n_tc > 1:
        pref = [t for t in fitting if (h // t) % n_tc == 0]
        if pref:
            return max(pref)
    return max(fitting)


@functools.partial(jax.jit, static_argnames=("input_dtype", "gram_dtype"))
def texture_loss(x, y, input_dtype=jnp.float32, gram_dtype=jnp.float32):
    """TextureLoss.forward(x, y) for NCHW float inputs.

    input_dtype=jnp.bfloat16 halves HBM->VMEM slab traffic / pipeline buffers
    (pooling math stays f32); gram_dtype=jnp.bfloat16 selects the bf16 MXU path
    for the Gram contraction (f32 accumulation).  Defaults keep exact f32
    PyTorch semantics.
    """
    b, c, h, w = x.shape
    assert y.shape == x.shape
    bc = b * c

    cfg = _chip_config()
    th = _pick_tile_rows(h, w, bc, cfg["slab_budget"], cfg["n_tc"])
    n_slabs = h // th
    n_par = cfg["n_tc"] if n_slabs >= cfg["n_tc"] else 1
    n_k = -(-n_slabs // n_par)                   # ceil; tail guarded in-kernel
    needs_guard = (n_par * n_k != n_slabs)

    x_f32 = x.reshape(bc, h, w).astype(jnp.float32)
    y_f32 = y.reshape(bc, h, w).astype(jnp.float32)
    x_in = x_f32.reshape(bc, h * w).astype(input_dtype)
    y_in = y_f32.reshape(bc, h * w).astype(input_dtype)

    # Halo rows (row just above / below each slab; zeros at the image border)
    # built from strided row slices -- no full padded copies of x / y.
    def edge_rows(f3):
        zero = jnp.zeros((bc, 1, w), jnp.float32)
        if n_slabs == 1:
            return zero, zero
        top = jnp.concatenate([zero, f3[:, th - 1:h - 1:th, :]], axis=1)
        bot = jnp.concatenate([f3[:, th:h:th, :], zero], axis=1)
        return top, bot                          # (bc, n_slabs, w)

    xt, xb = edge_rows(x_f32)
    yt, yb = edge_rows(y_f32)

    def hsum_rows(a):
        # 3-tap horizontal sum with zero padding, on tiny (bc, n_slabs, w) rows.
        ap = jnp.pad(a, ((0, 0), (0, 0), (1, 1)))
        return ap[..., :-2] + ap[..., 1:-1] + ap[..., 2:]

    # Pre-hsummed halos of u = x - y and v = x + y -> (n_slabs, bc, w) f32.
    ut_hs = jnp.transpose(hsum_rows(xt - yt), (1, 0, 2))
    ub_hs = jnp.transpose(hsum_rows(xb - yb), (1, 0, 2))
    vt_hs = jnp.transpose(hsum_rows(xt + yt), (1, 0, 2))
    vb_hs = jnp.transpose(hsum_rows(xb + yb), (1, 0, 2))

    if needs_guard:
        def slab_block(p, k):
            return jnp.minimum(p * n_k + k, n_slabs - 1)
    else:
        def slab_block(p, k):
            return p * n_k + k

    slab_spec = pl.BlockSpec((bc, th * w), lambda p, k: (0, slab_block(p, k)))
    halo_spec = pl.BlockSpec((None, bc, w), lambda p, k: (slab_block(p, k), 0, 0))
    out_spec = pl.BlockSpec((None, bc, bc), lambda p, k: (p, 0, 0))

    in_itemsize = jnp.dtype(input_dtype).itemsize
    compiler_params = pltpu.CompilerParams(
        dimension_semantics=("parallel", "arbitrary"),
        vmem_limit_bytes=int(cfg["vmem_limit"]),
    )
    cost = pl.CostEstimate(
        flops=2 * bc * bc * h * w + 30 * bc * h * w,
        transcendentals=0,
        bytes_accessed=2 * bc * h * w * in_itemsize
        + 4 * n_slabs * bc * w * 4 + n_par * bc * bc * 4,
    )

    kernel = functools.partial(
        _texture_gram_kernel, w=w, th=th, n_slabs=n_slabs, n_k=n_k,
        gram_dtype=gram_dtype, needs_guard=needs_guard)

    # TODO(synk): when W is within ~25% of a multiple of 128, zero-pad W to a
    # lane multiple in the wrapper layout (drops the left/right selects and
    # makes the +-W rolls whole-vreg shifts).
    parts = pl.pallas_call(
        kernel,
        out_shape=jax.ShapeDtypeStruct((n_par, bc, bc), jnp.float32),
        grid=(n_par, n_k),
        in_specs=[slab_spec, slab_spec,
                  halo_spec, halo_spec, halo_spec, halo_spec],
        out_specs=out_spec,
        compiler_params=compiler_params,
        cost_estimate=cost,
    )(x_in, y_in, ut_hs, ub_hs, vt_hs, vb_hs)

    a = parts.sum(axis=0)                    # combine per-core partials: D @ S^T
    gram_diff = 0.5 * (a + a.T)              # = Gram(x_var) - Gram(y_var)
    return jnp.mean(gram_diff * gram_diff)   # F.mse_loss(..., reduction='mean')


def _texture_loss_ref(x, y):
    """Pure-JAX reference (independent shifted-sum pooling) for validation."""
    def avg_pool(v):
        b, c, h, w = v.shape
        vp = jnp.pad(v, ((0, 0), (0, 0), (1, 1), (1, 1)))
        acc = jnp.zeros_like(v)
        for di in range(3):
            for dj in range(3):
                acc = acc + vp[:, :, di:di + h, dj:dj + w]
        return acc / 9.0

    def gram(v):
        b, c, h, w = v.shape
        f = v.reshape(b * c, h * w)
        return f @ f.T

    gx = gram(x - avg_pool(x))
    gy = gram(y - avg_pool(y))
    return jnp.mean((gx - gy) ** 2)


if __name__ == "__main__":
    key = jax.random.PRNGKey(0)
    kx, ky = jax.random.split(key)
    shape = (2, 4, 16, 16)  # (B, C, H, W)
    x = jax.random.normal(kx, shape, dtype=jnp.float32)
    y = jax.random.normal(ky, shape, dtype=jnp.float32)

    ref = _texture_loss_ref(x, y)

    # Exact (f32) path -- matches the PyTorch module semantics.
    loss = texture_loss(x, y)
    jax.block_until_ready(loss)
    np.testing.assert_allclose(np.asarray(loss), np.asarray(ref),
                               rtol=1e-2, atol=1e-2)

    # Fast path: bf16 slab DMA + bf16 MXU Gram operands, f32 accumulation
    # (main lever for mem-bound shapes on v6e/v7x).
    loss_fast = texture_loss(x, y, input_dtype=jnp.bfloat16,
                             gram_dtype=jnp.bfloat16)
    jax.block_until_ready(loss_fast)
    np.testing.assert_allclose(np.asarray(loss_fast), np.asarray(ref),
                               rtol=1e-1, atol=1e-1)

    print("KERNEL_OK")
</pallas_src>

<mosaic_0001>
module attributes {stable_mosaic.version = 11 : i64} {
  func.func @_texture_gram_kernel(%arg0: i32, %arg1: i32, %arg2: memref<8x256xf32, #tpu.memory_space<vmem>>, %arg3: memref<8x256xf32, #tpu.memory_space<vmem>>, %arg4: memref<1x8x16xf32, #tpu.memory_space<vmem>>, %arg5: memref<1x8x16xf32, #tpu.memory_space<vmem>>, %arg6: memref<1x8x16xf32, #tpu.memory_space<vmem>>, %arg7: memref<1x8x16xf32, #tpu.memory_space<vmem>>, %arg8: memref<1x8x8xf32, #tpu.memory_space<vmem>>) attributes {dimension_semantics = [#tpu.dimension_semantics<parallel>, #tpu.dimension_semantics<arbitrary>], iteration_bounds = array<i64: 1, 1>, scalar_prefetch = 0 : i64, scratch_operands = 0 : i64, tpu.core_type = #tpu.core_type<tc>, window_params = [{transform_indices = @transform_0, window_bounds = array<i64: 8, 256>}, {transform_indices = @transform_1, window_bounds = array<i64: 8, 256>}, {transform_indices = @transform_2, window_bounds = array<i64: 1, 8, 16>}, {transform_indices = @transform_3, window_bounds = array<i64: 1, 8, 16>}, {transform_indices = @transform_4, window_bounds = array<i64: 1, 8, 16>}, {transform_indices = @transform_5, window_bounds = array<i64: 1, 8, 16>}, {transform_indices = @transform_6, window_bounds = array<i64: 1, 8, 8>}]} {
    %c0_i32 = arith.constant 0 : i32
    %0 = arith.cmpi eq, %arg1, %c0_i32 : i32
    %1 = arith.extui %0 : i1 to i32
    %c0_i32_0 = arith.constant 0 : i32
    %2 = arith.cmpi ne, %1, %c0_i32_0 : i32
    scf.if %2 {
      %cst_41 = arith.constant 0.000000e+00 : f32
      %85 = vector.broadcast %cst_41 : f32 to vector<8x8xf32>
      %c0_42 = arith.constant 0 : index
      %c0_43 = arith.constant 0 : index
      %c0_44 = arith.constant 0 : index
      %86 = vector.load %arg8[%c0_42, %c0_43, %c0_44] : memref<1x8x8xf32, #tpu.memory_space<vmem>>, vector<1x8x8xf32>
      %87 = vector.shape_cast %86 : vector<1x8x8xf32> to vector<8x8xf32>
      %88 = vector.shape_cast %85 : vector<8x8xf32> to vector<1x8x8xf32>
      tpu.vector_store %arg8[%c0_42, %c0_43, %c0_44], %88 {strides = array<i32>} : memref<1x8x8xf32, #tpu.memory_space<vmem>>, vector<1x8x8xf32>,
    } else {
    }
    %c0 = arith.constant 0 : index
    %c0_1 = arith.constant 0 : index
    %3 = vector.load %arg2[%c0, %c0_1] : memref<8x256xf32, #tpu.memory_space<vmem>>, vector<8x256xf32>
    %c0_2 = arith.constant 0 : index
    %c0_3 = arith.constant 0 : index
    %4 = vector.load %arg3[%c0_2, %c0_3] : memref<8x256xf32, #tpu.memory_space<vmem>>, vector<8x256xf32>
    %5 = arith.subf %3, %4 : vector<8x256xf32>
    %6 = arith.addf %3, %4 : vector<8x256xf32>
    %7 = tpu.iota {dimensions = array<i32: 1>} : vector<8x256xi32>
    %c16_i32 = arith.constant 16 : i32
    %c0_i32_4 = arith.constant 0 : i32
    %8 = arith.cmpi eq, %c16_i32, %c0_i32_4 : i32
    %c1_i32 = arith.constant 1 : i32
    %9 = arith.select %8, %c1_i32, %c16_i32 : i32
    %10 = vector.broadcast %9 : i32 to vector<8x256xi32>
    %11 = arith.remsi %7, %10 : vector<8x256xi32>
    %c0_i32_5 = arith.constant 0 : i32
    %12 = vector.broadcast %c0_i32_5 : i32 to vector<8x256xi32>
    %13 = arith.cmpi ne, %11, %12 : vector<8x256xi32>
    %c0_i32_6 = arith.constant 0 : i32
    %14 = vector.broadcast %c0_i32_6 : i32 to vector<8x256xi32>
    %15 = arith.cmpi slt, %11, %14 : vector<8x256xi32>
    %c0_i32_7 = arith.constant 0 : i32
    %16 = arith.cmpi slt, %9, %c0_i32_7 : i32
    %17 = vector.broadcast %16 : i1 to vector<8x256xi1>
    %18 = vector.broadcast %17 : vector<8x256xi1> to vector<8x256xi1>
    %19 = arith.xori %15, %18 : vector<8x256xi1>
    %20 = arith.andi %19, %13 : vector<8x256xi1>
    %21 = vector.broadcast %9 : i32 to vector<8x256xi32>
    %22 = arith.addi %11, %21 : vector<8x256xi32>
    %23 = arith.select %20, %22, %11 : vector<8x256xi1>, vector<8x256xi32>
    %c0_i32_8 = arith.constant 0 : i32
    %24 = vector.broadcast %c0_i32_8 : i32 to vector<8x256xi32>
    %25 = arith.cmpi sgt, %23, %24 : vector<8x256xi32>
    %c15_i32 = arith.constant 15 : i32
    %26 = vector.broadcast %c15_i32 : i32 to vector<8x256xi32>
    %27 = arith.cmpi slt, %23, %26 : vector<8x256xi32>
    %c16_i32_9 = arith.constant 16 : i32
    %28 = vector.broadcast %c16_i32_9 : i32 to vector<8x256xi32>
    %29 = arith.cmpi slt, %7, %28 : vector<8x256xi32>
    %c240_i32 = arith.constant 240 : i32
    %30 = vector.broadcast %c240_i32 : i32 to vector<8x256xi32>
    %31 = arith.cmpi sge, %7, %30 : vector<8x256xi32>
    %c0_10 = arith.constant 0 : index
    %c0_11 = arith.constant 0 : index
    %c0_12 = arith.constant 0 : index
    %32 = vector.load %arg4[%c0_10, %c0_11, %c0_12] : memref<1x8x16xf32, #tpu.memory_space<vmem>>, vector<1x8x16xf32>
    %33 = vector.shape_cast %32 : vector<1x8x16xf32> to vector<8x16xf32>
    %c0_13 = arith.constant 0 : index
    %c0_14 = arith.constant 0 : index
    %c0_15 = arith.constant 0 : index
    %34 = vector.load %arg5[%c0_13, %c0_14, %c0_15] : memref<1x8x16xf32, #tpu.memory_space<vmem>>, vector<1x8x16xf32>
    %35 = vector.shape_cast %34 : vector<1x8x16xf32> to vector<8x16xf32>
    %c1_i32_16 = arith.constant 1 : i32
    %36 = tpu.dynamic_rotate %5 by %c1_i32_16 dim 1 : vector<8x256xf32>, i32 -> vector<8x256xf32>
    %cst = arith.constant 0.000000e+00 : f32
    %37 = vector.broadcast %cst : f32 to vector<8x256xf32>
    %38 = arith.select %25, %36, %37 : vector<8x256xi1>, vector<8x256xf32>
    %c255_i32 = arith.constant 255 : i32
    %39 = tpu.dynamic_rotate %5 by %c255_i32 dim 1 : vector<8x256xf32>, i32 -> vector<8x256xf32>
    %cst_17 = arith.constant 0.000000e+00 : f32
    %40 = vector.broadcast %cst_17 : f32 to vector<8x256xf32>
    %41 = arith.select %27, %39, %40 : vector<8x256xi1>, vector<8x256xf32>
    %42 = arith.addf %5, %38 : vector<8x256xf32>
    %43 = arith.addf %42, %41 : vector<8x256xf32>
    %44 = tpu.concatenate %33, %33, %33, %33, %33, %33, %33, %33, %33, %33, %33, %33, %33, %33, %33, %33 in 1 : vector<8x16xf32>, vector<8x16xf32>, vector<8x16xf32>, vector<8x16xf32>, vector<8x16xf32>, vector<8x16xf32>, vector<8x16xf32>, vector<8x16xf32>, vector<8x16xf32>, vector<8x16xf32>, vector<8x16xf32>, vector<8x16xf32>, vector<8x16xf32>, vector<8x16xf32>, vector<8x16xf32>, vector<8x16xf32> -> vector<8x256xf32>
    %c16_i32_18 = arith.constant 16 : i32
    %45 = tpu.dynamic_rotate %43 by %c16_i32_18 dim 1 : vector<8x256xf32>, i32 -> vector<8x256xf32>
    %46 = arith.select %29, %44, %45 : vector<8x256xi1>, vector<8x256xf32>
    %47 = tpu.concatenate %35, %35, %35, %35, %35, %35, %35, %35, %35, %35, %35, %35, %35, %35, %35, %35 in 1 : vector<8x16xf32>, vector<8x16xf32>, vector<8x16xf32>, vector<8x16xf32>, vector<8x16xf32>, vector<8x16xf32>, vector<8x16xf32>, vector<8x16xf32>, vector<8x16xf32>, vector<8x16xf32>, vector<8x16xf32>, vector<8x16xf32>, vector<8x16xf32>, vector<8x16xf32>, vector<8x16xf32>, vector<8x16xf32> -> vector<8x256xf32>
    %c240_i32_19 = arith.constant 240 : i32
    %48 = tpu.dynamic_rotate %43 by %c240_i32_19 dim 1 : vector<8x256xf32>, i32 -> vector<8x256xf32>
    %49 = arith.select %31, %47, %48 : vector<8x256xi1>, vector<8x256xf32>
    %50 = arith.addf %43, %46 : vector<8x256xf32>
    %51 = arith.addf %50, %49 : vector<8x256xf32>
    %cst_20 = arith.constant 0.111111112 : f32
    %52 = vector.broadcast %cst_20 : f32 to vector<8x256xf32>
    %53 = arith.mulf %51, %52 : vector<8x256xf32>
    %54 = arith.subf %5, %53 : vector<8x256xf32>
    %c0_21 = arith.constant 0 : index
    %c0_22 = arith.constant 0 : index
    %c0_23 = arith.constant 0 : index
    %55 = vector.load %arg6[%c0_21, %c0_22, %c0_23] : memref<1x8x16xf32, #tpu.memory_space<vmem>>, vector<1x8x16xf32>
    %56 = vector.shape_cast %55 : vector<1x8x16xf32> to vector<8x16xf32>
    %c0_24 = arith.constant 0 : index
    %c0_25 = arith.constant 0 : index
    %c0_26 = arith.constant 0 : index
    %57 = vector.load %arg7[%c0_24, %c0_25, %c0_26] : memref<1x8x16xf32, #tpu.memory_space<vmem>>, vector<1x8x16xf32>
    %58 = vector.shape_cast %57 : vector<1x8x16xf32> to vector<8x16xf32>
    %c1_i32_27 = arith.constant 1 : i32
    %59 = tpu.dynamic_rotate %6 by %c1_i32_27 dim 1 : vector<8x256xf32>, i32 -> vector<8x256xf32>
    %cst_28 = arith.constant 0.000000e+00 : f32
    %60 = vector.broadcast %cst_28 : f32 to vector<8x256xf32>
    %61 = arith.select %25, %59, %60 : vector<8x256xi1>, vector<8x256xf32>
    %c255_i32_29 = arith.constant 255 : i32
    %62 = tpu.dynamic_rotate %6 by %c255_i32_29 dim 1 : vector<8x256xf32>, i32 -> vector<8x256xf32>
    %cst_30 = arith.constant 0.000000e+00 : f32
    %63 = vector.broadcast %cst_30 : f32 to vector<8x256xf32>
    %64 = arith.select %27, %62, %63 : vector<8x256xi1>, vector<8x256xf32>
    %65 = arith.addf %6, %61 : vector<8x256xf32>
    %66 = arith.addf %65, %64 : vector<8x256xf32>
    %67 = tpu.concatenate %56, %56, %56, %56, %56, %56, %56, %56, %56, %56, %56, %56, %56, %56, %56, %56 in 1 : vector<8x16xf32>, vector<8x16xf32>, vector<8x16xf32>, vector<8x16xf32>, vector<8x16xf32>, vector<8x16xf32>, vector<8x16xf32>, vector<8x16xf32>, vector<8x16xf32>, vector<8x16xf32>, vector<8x16xf32>, vector<8x16xf32>, vector<8x16xf32>, vector<8x16xf32>, vector<8x16xf32>, vector<8x16xf32> -> vector<8x256xf32>
    %c16_i32_31 = arith.constant 16 : i32
    %68 = tpu.dynamic_rotate %66 by %c16_i32_31 dim 1 : vector<8x256xf32>, i32 -> vector<8x256xf32>
    %69 = arith.select %29, %67, %68 : vector<8x256xi1>, vector<8x256xf32>
    %70 = tpu.concatenate %58, %58, %58, %58, %58, %58, %58, %58, %58, %58, %58, %58, %58, %58, %58, %58 in 1 : vector<8x16xf32>, vector<8x16xf32>, vector<8x16xf32>, vector<8x16xf32>, vector<8x16xf32>, vector<8x16xf32>, vector<8x16xf32>, vector<8x16xf32>, vector<8x16xf32>, vector<8x16xf32>, vector<8x16xf32>, vector<8x16xf32>, vector<8x16xf32>, vector<8x16xf32>, vector<8x16xf32>, vector<8x16xf32> -> vector<8x256xf32>
    %c240_i32_32 = arith.constant 240 : i32
    %71 = tpu.dynamic_rotate %66 by %c240_i32_32 dim 1 : vector<8x256xf32>, i32 -> vector<8x256xf32>
    %72 = arith.select %31, %70, %71 : vector<8x256xi1>, vector<8x256xf32>
    %73 = arith.addf %66, %69 : vector<8x256xf32>
    %74 = arith.addf %73, %72 : vector<8x256xf32>
    %cst_33 = arith.constant 0.111111112 : f32
    %75 = vector.broadcast %cst_33 : f32 to vector<8x256xf32>
    %76 = arith.mulf %74, %75 : vector<8x256xf32>
    %77 = arith.subf %6, %76 : vector<8x256xf32>
    %c0_34 = arith.constant 0 : index
    %c0_35 = arith.constant 0 : index
    %c0_36 = arith.constant 0 : index
    %78 = vector.load %arg8[%c0_34, %c0_35, %c0_36] : memref<1x8x8xf32, #tpu.memory_space<vmem>>, vector<1x8x8xf32>
    %79 = vector.shape_cast %78 : vector<1x8x8xf32> to vector<8x8xf32>
    %cst_37 = arith.constant dense<0.000000e+00> : vector<8x8xf32>
    %80 = tpu.matmul %54, %77, %cst_37 {dimension_numbers = #tpu.dot_dimension_numbers<[1], [1], [0], [0], [0, 0, 1, 0], [], []>} : vector<8x256xf32>, vector<8x256xf32>, vector<8x8xf32> -> vector<8x8xf32>
    %81 = arith.addf %79, %80 : vector<8x8xf32>
    %c0_38 = arith.constant 0 : index
    %c0_39 = arith.constant 0 : index
    %c0_40 = arith.constant 0 : index
    %82 = vector.load %arg8[%c0_38, %c0_39, %c0_40] : memref<1x8x8xf32, #tpu.memory_space<vmem>>, vector<1x8x8xf32>
    %83 = vector.shape_cast %82 : vector<1x8x8xf32> to vector<8x8xf32>
    %84 = vector.shape_cast %81 : vector<8x8xf32> to vector<1x8x8xf32>
    tpu.vector_store %arg8[%c0_38, %c0_39, %c0_40], %84 {strides = array<i32>} : memref<1x8x8xf32, #tpu.memory_space<vmem>>, vector<1x8x8xf32>,
    return
  }
  func.func @transform_0(%arg0: i32, %arg1: i32) -> (i32, i32) {
    %c1_i32 = arith.constant 1 : i32
    %0 = arith.muli %arg0, %c1_i32 : i32
    %1 = arith.addi %0, %arg1 : i32
    %c0_i32 = arith.constant 0 : i32
    %c0_i32_0 = arith.constant 0 : i32
    return %c0_i32, %1 : i32, i32
  }
  func.func @transform_1(%arg0: i32, %arg1: i32) -> (i32, i32) {
    %c1_i32 = arith.constant 1 : i32
    %0 = arith.muli %arg0, %c1_i32 : i32
    %1 = arith.addi %0, %arg1 : i32
    %c0_i32 = arith.constant 0 : i32
    %c0_i32_0 = arith.constant 0 : i32
    return %c0_i32, %1 : i32, i32
  }
  func.func @transform_2(%arg0: i32, %arg1: i32) -> (i32, i32, i32) {
    %c1_i32 = arith.constant 1 : i32
    %0 = arith.muli %arg0, %c1_i32 : i32
    %1 = arith.addi %0, %arg1 : i32
    %c0_i32 = arith.constant 0 : i32
    %c0_i32_0 = arith.constant 0 : i32
    %c0_i32_1 = arith.constant 0 : i32
    return %1, %c0_i32, %c0_i32_0 : i32, i32, i32
  }
  func.func @transform_3(%arg0: i32, %arg1: i32) -> (i32, i32, i32) {
    %c1_i32 = arith.constant 1 : i32
    %0 = arith.muli %arg0, %c1_i32 : i32
    %1 = arith.addi %0, %arg1 : i32
    %c0_i32 = arith.constant 0 : i32
    %c0_i32_0 = arith.constant 0 : i32
    %c0_i32_1 = arith.constant 0 : i32
    return %1, %c0_i32, %c0_i32_0 : i32, i32, i32
  }
  func.func @transform_4(%arg0: i32, %arg1: i32) -> (i32, i32, i32) {
    %c1_i32 = arith.constant 1 : i32
    %0 = arith.muli %arg0, %c1_i32 : i32
    %1 = arith.addi %0, %arg1 : i32
    %c0_i32 = arith.constant 0 : i32
    %c0_i32_0 = arith.constant 0 : i32
    %c0_i32_1 = arith.constant 0 : i32
    return %1, %c0_i32, %c0_i32_0 : i32, i32, i32
  }
  func.func @transform_5(%arg0: i32, %arg1: i32) -> (i32, i32, i32) {
    %c1_i32 = arith.constant 1 : i32
    %0 = arith.muli %arg0, %c1_i32 : i32
    %1 = arith.addi %0, %arg1 : i32
    %c0_i32 = arith.constant 0 : i32
    %c0_i32_0 = arith.constant 0 : i32
    %c0_i32_1 = arith.constant 0 : i32
    return %1, %c0_i32, %c0_i32_0 : i32, i32, i32
  }
  func.func @transform_6(%arg0: i32, %arg1: i32) -> (i32, i32, i32) {
    %c0_i32 = arith.constant 0 : i32
    %c0_i32_0 = arith.constant 0 : i32
    %c0_i32_1 = arith.constant 0 : i32
    return %arg0, %c0_i32, %c0_i32_0 : i32, i32, i32
  }
}

</mosaic_0001>

<bundles_post_ra>
// kernel: texture_loss.1
= control target key start
LH: loop header
LB: loop body
LE: loop exit
PB: predicated region body
PF: predicated region fallthrough
CT: control target
= control target key end

     0   :  { %s496_s25 = smov 127   ;;  %s497_s26 = smov 1   ;;  %v149_v12 = vlaneseq  ;;  %vm230_vm6 = vcmask 130048   ;;  %vm232_vm7 = vcmask 261120   ;;  %vm234_vm8 = vcmask 392192   ;;  %s786_s0 = inlined_call_operand.vmem [shape: f32[8,256], index: 0, kind: input, shape index: {}]   ;;  %s787_s1 = inlined_call_operand.vmem [shape: f32[8,256], index: 1, kind: input, shape index: {}]   ;;  %s788_s4 = inlined_call_operand.vmem [shape: f32[1,8,16], index: 4, kind: input, shape index: {}, may-alias: {2,3,4,5}]   ;;  %s789_s5 = inlined_call_operand.vmem [shape: f32[1,8,16], index: 5, kind: input, shape index: {}, may-alias: {2,3,4,5}]   ;;  %s790_s2 = inlined_call_operand.vmem [shape: f32[1,8,16], index: 2, kind: input, shape index: {}, may-alias: {2,3,4,5}]   ;;  %s791_s3 = inlined_call_operand.vmem [shape: f32[1,8,16], index: 3, kind: input, shape index: {}, may-alias: {2,3,4,5}]   ;;  %s792_s6 = inlined_call_operand.vmem [shape: f32[1,8,8], index: 6, kind: output, shape index: {}]  }
   0x1   :  { %v141_v0 = vld [vmem:[%s786_s0] sm:$0xff]  ;;  %v142_v4 = vld [vmem:[%s786_s0 + $0x8] sm:$0xff]  ;;  %s499_s8 = smov 32   ;;  %s500_s9 = smov 48   ;;  %vm236_vm9 = vcmask 523264   ;;  %vm238_vm10 = vcmask 654336  }
   0x2   :  { %v143_v1 = vld [vmem:[%s787_s1] sm:$0xff]  ;;  %v144_v5 = vld [vmem:[%s787_s1 + $0x8] sm:$0xff]  ;;  %s498_s1 = smov 16   ;;  %s501_s13 = smov 64   ;;  %v623_v13 = vand.u32 127, %v149_v12  ;;  %vm240_vm11 = vcmask 785408  }
   0x3   :  { %v547_v2 = vadd.f32 %v143_v1, %v141_v0  ;;  %v549_v3 = vsub.f32 %v141_v0, %v143_v1  ;;  %v560_v6 = vadd.f32 %v144_v5, %v142_v4  ;;  %v562_v7 = vsub.f32 %v142_v4, %v144_v5  ;;  %v572_v8 = vld [vmem:[%s788_s4] sm:$0xff]  ;;  %s504_s16 = smov 112  }
   0x4   :  { %v581_v9 = vld [vmem:[%s789_s5] sm:$0xff]  ;;  %s502_s5 = smov 80   ;;  %v626_v15 = vadd.s32 128, %v623_v13  ;;  %v156_v18 = vand.u32 15, %v623_v13  ;;  %vm199_vm0 = vcmp.lt.s32.totalorder %v623_v13, 127  ;;  %vm190_vm1 = vcmp.lt.s32.totalorder %v623_v13, 1 }
   0x5   :  { %308 = vrot.lane.b32.xlu1 %v547_v2, %s496_s25  ;;  %300 = vrot.lane.b32.xlu0 %v547_v2, %s497_s26  ;;  %v588_v10 = vld [vmem:[%s790_s2] sm:$0xff]  ;;  %s503_s2 = smov 96   ;;  %vm180_vm12 = vcmp.lt.s32.totalorder %v623_v13, 16  ;;  %vm242_vm13 = vcmask 916480   ;;  %vm285_vm14 = vcmp.lt.s32.totalorder %v623_v13, 112 }
   0x6   :  { %186 = vrot.lane.b32.xlu2 %v549_v3, %s497_s26  ;;  %v600_v11 = vld [vmem:[%s791_s3] sm:$0xff]  ;;  %v163_v19 = vand.u32 15, %v626_v15  ;;  %vm632_vm2 = vcmp.gt.s32.totalorder %v156_v18, 0  ;;  %vm640_vm4 = vcmp.lt.s32.totalorder %v156_v18, 15  ;;  %vm183_vm15 = vcmp.ge.s32.totalorder %v626_v15, 240 }
   0x8   :  { %vm636_vm3 = vcmp.gt.s32.totalorder %v163_v19, 0  ;;  %vm644_vm5 = vcmp.lt.s32.totalorder %v163_v19, 15 }
   0xd   :  { %310 = vrot.lane.b32.xlu1 %v560_v6, %s496_s25  ;;  %302 = vrot.lane.b32.xlu0 %v560_v6, %s497_s26 }
   0xe   :  { %188 = vrot.lane.b32.xlu2 %v562_v7, %s497_s26 }
  0x15   :  { %195 = vrot.lane.b32.xlu0 %v549_v3, %s496_s25  ;;  %197 = vrot.lane.b32.xlu1 %v562_v7, %s496_s25 }
  0x16   :  { %321 = vrot.lane.b32.xlu2 %v572_v8, %s498_s1 }
  0x1d   :  { %324 = vrot.lane.b32.xlu0 %v572_v8, %s499_s8  ;;  %327 = vrot.lane.b32.xlu1 %v572_v8, %s500_s9 }
  0x1e   :  { %358 = vrot.lane.b32.xlu2 %v581_v9, %s498_s1 }
  0x25   :  { %209 = vrot.lane.b32.xlu0 %v588_v10, %s498_s1  ;;  %330 = vrot.lane.b32.xlu1 %v572_v8, %s501_s13 }
  0x26   :  { %361 = vrot.lane.b32.xlu2 %v581_v9, %s499_s8 }
  0x2d   :  { %212 = vrot.lane.b32.xlu0 %v588_v10, %s499_s8  ;;  %333 = vrot.lane.b32.xlu1 %v572_v8, %s502_s5 }
  0x2e   :  { %364 = vrot.lane.b32.xlu2 %v581_v9, %s500_s9 }
  0x35   :  { %215 = vrot.lane.b32.xlu0 %v588_v10, %s500_s9  ;;  %253 = vrot.lane.b32.xlu1 %v600_v11, %s498_s1 }
  0x36   :  { %336 = vrot.lane.b32.xlu2 %v572_v8, %s503_s2 }
  0x3d   :  { %367 = vrot.lane.b32.xlu0 %v581_v9, %s501_s13  ;;  %218 = vrot.lane.b32.xlu1 %v588_v10, %s501_s13 }
  0x3e   :  { %256 = vrot.lane.b32.xlu2 %v600_v11, %s499_s8 }
  0x45   :  { %339 = vrot.lane.b32.xlu0 %v572_v8, %s504_s16  ;;  %221 = vrot.lane.b32.xlu1 %v588_v10, %s502_s5 }
  0x46   :  { %259 = vrot.lane.b32.xlu2 %v600_v11, %s500_s9 }
  0x4d   :  { %370 = vrot.lane.b32.xlu0 %v581_v9, %s502_s5  ;;  %224 = vrot.lane.b32.xlu1 %v588_v10, %s503_s2 }
  0x4e   :  { %262 = vrot.lane.b32.xlu2 %v600_v11, %s501_s13 }
  0x55   :  { %373 = vrot.lane.b32.xlu0 %v581_v9, %s503_s2  ;;  %268 = vrot.lane.b32.xlu1 %v600_v11, %s503_s2 }
  0x5d   :  { %376 = vrot.lane.b32.xlu0 %v581_v9, %s504_s16 }
  0x60   :  { %v187_v14 = vpop.permute.xlu2 %186 }
  0x65   :  { %227 = vrot.lane.b32.xlu0 %v588_v10, %s504_s16 }
  0x68   :  { %v189_v20 = vpop.permute.xlu2 %188 }
  0x69   :  { %v192_v27 = vsel %vm190_vm1, %v189_v20, %v187_v14  ;;  %v191_v46 = vsel %vm190_vm1, %v187_v14, %v189_v20 }
  0x6a   :  { %v193_v38 = vsel %vm632_vm2, %v192_v27, 0.0  ;;  %v194_v49 = vsel %vm636_vm3, %v191_v46, 0.0 }
  0x6b   :  { %v204_v41 = vadd.f32 %v193_v38, %v549_v3  ;;  %v205_v53 = vadd.f32 %v194_v49, %v562_v7 }
  0x6d   :  { %265 = vrot.lane.b32.xlu0 %v600_v11, %s502_s5 }
  0x70   :  { %v322_v48 = vpop.permute.xlu2 %321 }
  0x71   :  { %v342_v50 = vsel %vm230_vm6, %v572_v8, %v322_v48 }
  0x77   :  { %v309_v16 = vpop.permute.xlu1 %308  ;;  %v301_v17 = vpop.permute.xlu0 %300 }
  0x78   :  { %v359_v63 = vpop.permute.xlu2 %358 }
  0x7f   :  { %v311_v25 = vpop.permute.xlu1 %310  ;;  %v303_v26 = vpop.permute.xlu0 %302 }
  0x80   :  { %v312_v28 = vsel %vm199_vm0, %v309_v16, %v311_v25  ;;  %v313_v29 = vsel %vm199_vm0, %v311_v25, %v309_v16  ;;  %v304_v30 = vsel %vm190_vm1, %v301_v17, %v303_v26  ;;  %v305_v31 = vsel %vm190_vm1, %v303_v26, %v301_v17  ;;  %v362_v1 = vpop.permute.xlu2 %361 }
  0x81   :  { %v306_v32 = vsel %vm632_vm2, %v305_v31, 0.0  ;;  %v307_v33 = vsel %vm636_vm3, %v304_v30, 0.0  ;;  %v314_v36 = vsel %vm640_vm4, %v312_v28, 0.0  ;;  %v315_v37 = vsel %vm644_vm5, %v313_v29, 0.0 }
  0x82   :  { %v316_v34 = vadd.f32 %v306_v32, %v547_v2  ;;  %v317_v35 = vadd.f32 %v307_v33, %v560_v6  ;;  %v379_v28 = vsel %vm230_vm6, %v581_v9, %v359_v63 }
  0x83   :  { %v380_v31 = vsel %vm232_vm7, %v379_v28, %v362_v1 }
  0x84   :  { %v670_v39 = vadd.f32 %v316_v34, %v314_v36  ;;  %v672_v40 = vadd.f32 %v317_v35, %v315_v37 }
  0x86   :  { %349 = vrot.lane.b32.xlu1 %v670_v39, %s498_s1  ;;  %351 = vrot.lane.b32.xlu2 %v672_v40, %s498_s1 }
  0x87   :  { %v196_v42 = vpop.permute.xlu0 %195  ;;  %v198_v43 = vpop.permute.xlu1 %197 }
  0x88   :  { %v200_v44 = vsel %vm199_vm0, %v196_v42, %v198_v43  ;;  %v201_v51 = vsel %vm199_vm0, %v198_v43, %v196_v42  ;;  %v365_v5 = vpop.permute.xlu2 %364  ;;  %vm139_vm0 = vcmask 64512  }
  0x89   :  { %v202_v45 = vsel %vm640_vm4, %v200_v44, 0.0  ;;  %v203_v56 = vsel %vm644_vm5, %v201_v51, 0.0  ;;  %v381_v33 = vsel %vm234_vm8, %v380_v31, %v365_v5 }
  0x8a   :  { %v685_v47 = vadd.f32 %v204_v41, %v202_v45  ;;  %v704_v58 = vadd.f32 %v205_v53, %v203_v56 }
  0x8c   :  { %281 = vrot.lane.b32.xlu0 %v685_v47, %s504_s16 }
  0x8e   :  { %386 = vrot.lane.b32.xlu1 %v670_v39, %s504_s16  ;;  %388 = vrot.lane.b32.xlu2 %v672_v40, %s504_s16 }
  0x8f   :  { %v325_v52 = vpop.permute.xlu0 %324  ;;  %v328_v54 = vpop.permute.xlu1 %327 }
  0x90   :  { %v343_v55 = vsel %vm232_vm7, %v342_v50, %v325_v52  ;;  %v337_v14 = vpop.permute.xlu2 %336 }
  0x91   :  { %v344_v57 = vsel %vm234_vm8, %v343_v55, %v328_v54 }
  0x96   :  { %244 = vrot.lane.b32.xlu1 %v685_v47, %s498_s1  ;;  %246 = vrot.lane.b32.xlu2 %v704_v58, %s498_s1 }
  0x97   :  { %v210_v59 = vpop.permute.xlu0 %209  ;;  %v331_v0 = vpop.permute.xlu1 %330 }
  0x98   :  { %v231_v60 = vsel %vm230_vm6, %v588_v10, %v210_v59  ;;  %v257_v10 = vpop.permute.xlu2 %256  ;;  %v345_v27 = vsel %vm236_vm9, %v344_v57, %v331_v0 }
  0x9e   :  { %283 = vrot.lane.b32.xlu1 %v704_v58, %s504_s16  ;;  %271 = vrot.lane.b32.xlu2 %v600_v11, %s504_s16 }
  0x9f   :  { %v213_v61 = vpop.permute.xlu0 %212  ;;  %v334_v4 = vpop.permute.xlu1 %333 }
  0xa0   :  { %v233_v62 = vsel %vm232_vm7, %v231_v60, %v213_v61  ;;  %v260_v20 = vpop.permute.xlu2 %259  ;;  %v346_v30 = vsel %vm238_vm10, %v345_v27, %v334_v4 }
  0xa1   :  { %v347_v34 = vsel %vm240_vm11, %v346_v30, %v337_v14 }
  0xa7   :  { %v216_v8 = vpop.permute.xlu0 %215  ;;  %v254_v12 = vpop.permute.xlu1 %253 }
  0xa8   :  { %v263_v23 = vpop.permute.xlu2 %262  ;;  %v235_v52 = vsel %vm234_vm8, %v233_v62, %v216_v8  ;;  %v274_v55 = vsel %vm230_vm6, %v600_v11, %v254_v12 }
  0xa9   :  { %v275_v60 = vsel %vm232_vm7, %v274_v55, %v257_v10 }
  0xaa   :  { %v276_v4 = vsel %vm234_vm8, %v275_v60, %v260_v20 }
  0xab   :  { %v277_v8 = vsel %vm236_vm9, %v276_v4, %v263_v23 }
  0xaf   :  { %v368_v16 = vpop.permute.xlu0 %367  ;;  %v219_v17 = vpop.permute.xlu1 %218 }
  0xb0   :  { %v382_v37 = vsel %vm236_vm9, %v381_v33, %v368_v16 }
  0xb7   :  { %v340_v18 = vpop.permute.xlu0 %339  ;;  %v222_v19 = vpop.permute.xlu1 %221 }
  0xb8   :  { %v348_v9 = vsel %vm242_vm13, %v347_v34, %v340_v18 }
  0xbf   :  { %v371_v21 = vpop.permute.xlu0 %370  ;;  %v225_v22 = vpop.permute.xlu1 %224 }
  0xc0   :  { %v383_v43 = vsel %vm238_vm10, %v382_v37, %v371_v21 }
  0xc7   :  { %v374_v24 = vpop.permute.xlu0 %373  ;;  %v269_v25 = vpop.permute.xlu1 %268 }
  0xc8   :  { %v384_v44 = vsel %vm240_vm11, %v383_v43, %v374_v24 }
  0xcf   :  { %v377_v29 = vpop.permute.xlu0 %376 }
  0xd0   :  { %v385_v48 = vsel %vm242_vm13, %v384_v44, %v377_v29 }
  0xd7   :  { %v228_v41 = vpop.permute.xlu0 %227 }
  0xdf   :  { %v266_v0 = vpop.permute.xlu0 %265 }
  0xe0   :  { %v352_v26 = vpop.permute.xlu2 %351 }
  0xe8   :  { %v389_v35 = vpop.permute.xlu2 %388 }
  0xf0   :  { %v247_v56 = vpop.permute.xlu2 %246 }
  0xf8   :  { %v350_v32 = vpop.permute.xlu1 %349  ;;  %v272_v14 = vpop.permute.xlu2 %271 }
  0xf9   :  { %v354_v36 = vsel %vm180_vm12, %v352_v26, %v350_v32  ;;  %v353_v42 = vsel %vm180_vm12, %v350_v32, %v352_v26 }
  0xfa   :  { %v355_v38 = vsel %vm180_vm12, %v348_v9, %v354_v36  ;;  %v395_v49 = vadd.f32 %v353_v42, %v672_v40  ;;  %v237_v40 = vsel %vm236_vm9, %v235_v52, %v219_v17 }
  0xfb   :  { %v394_v46 = vadd.f32 %v355_v38, %v670_v39  ;;  %v239_v62 = vsel %vm238_vm10, %v237_v40, %v222_v19 }
  0xfc   :  { %v241_v5 = vsel %vm240_vm11, %v239_v62, %v225_v22 }
  0xfd   :  { %v243_v12 = vsel %vm242_vm13, %v241_v5, %v228_v41 }
  0xfe   :  { %v282_v10 = vpop.permute.xlu0 %281 }
 0x100   :  { %v387_v45 = vpop.permute.xlu1 %386 }
 0x101   :  { %v390_v50 = vsel %vm285_vm14, %v387_v45, %v389_v35  ;;  %v391_v51 = vsel %vm285_vm14, %v389_v35, %v387_v45 }
 0x102   :  { %v396_v53 = vadd.f32 %v394_v46, %v390_v50  ;;  %v393_v54 = vsel %vm183_vm15, %v385_v48, %v391_v51 }
 0x103   :  { %v397_v39 = vadd.f32 %v395_v49, %v393_v54 }
 0x104   :  { %v398_v57 = vmul.f32 0.11111111, %v396_v53 }
 0x105   :  { %v399_v59 = vmul.f32 0.11111111, %v397_v39 }
 0x106   :  { %v400_v61 = vsub.f32 %v547_v2, %v398_v57  ;;  %v278_v2 = vsel %vm238_vm10, %v277_v8, %v266_v0 }
 0x107   :  { %v401_v63 = vsub.f32 %v560_v6, %v399_v59  ;;  %v279_v17 = vsel %vm240_vm11, %v278_v2, %v269_v25 }
 0x108   :  { %v245_v1 = vpop.permute.xlu1 %244  ;;  %418 = vmatpush.xpose.msra.mxu0 %v400_v61  ;;  %v280_v20 = vsel %vm242_vm13, %v279_v17, %v272_v14 }
 0x109   :  { %438 = vmatpush.xpose.msra.mxu1 %v401_v63  ;;  %v249_v11 = vsel %vm180_vm12, %v247_v56, %v245_v1  ;;  %v248_v16 = vsel %vm180_vm12, %v245_v1, %v247_v56 }
 0x10a   :  { %v250_v6 = vsel %vm180_vm12, %v243_v12, %v249_v11  ;;  %v291_v21 = vadd.f32 %v248_v16, %v704_v58  ;;  %v505_v58 = vmov 0.0  }
 0x10b   :  { %v290_v19 = vadd.f32 %v250_v6, %v685_v47  ;;  %140 = vst.msk [vmem:[%s792_s6] sm:$0xff] %vm139_vm0, %v505_v58 }
 0x110   :  { %v284_v18 = vpop.permute.xlu1 %283 }
 0x111   :  { %v286_v22 = vsel %vm285_vm14, %v282_v10, %v284_v18  ;;  %v287_v23 = vsel %vm285_vm14, %v284_v18, %v282_v10 }
 0x112   :  { %v289_v24 = vsel %vm183_vm15, %v280_v20, %v287_v23  ;;  %v292_v26 = vadd.f32 %v290_v19, %v286_v22  ;;  %v402_v15 = vld [vmem:[%s792_s6] sm:$0xff] }
 0x113   :  { %v293_v27 = vadd.f32 %v291_v21, %v289_v24 }
 0x114   :  { %v294_v25 = vmul.f32 0.11111111, %v292_v26 }
 0x115   :  { %v295_v28 = vmul.f32 0.11111111, %v293_v27 }
 0x116   :  { %v296_v29 = vsub.f32 %v549_v3, %v294_v25 }
 0x117   :  { %v297_v47 = vsub.f32 %v562_v7, %v295_v28 }
 0x118   :  { %419 = vmatmul.f32.vlgmr.msra.gmra.mxu0 %v296_v29 }
 0x119   :  { %439 = vmatmul.f32.vlgmr.msra.gmra.mxu1 %v297_v47 }
 0x195   :  { %v420_v13 = vpop.f32.mrf.mxu0 }
 0x196   :  { %v440_v30 = vpop.f32.mrf.mxu1 }
 0x197   :  { %v441_v31 = vadd.f32 %v440_v30, %v420_v13 }
 0x199   :  { %v443_v32 = vadd.f32 %v441_v31, %v402_v15 }
 0x19b   :  { %445 = vst.msk [vmem:[%s792_s6] sm:$0xff] %vm139_vm0, %v443_v32 }

</bundles_post_ra>
